<compile_context>
chip_gen: v7x
topology: tpu7x:2x2x1
jax: 0.10.0
libtpu: 0.0.40
codegen_flags: <defaults>
</compile_context>

<pallas_src>
import functools

import jax
import jax.numpy as jnp
from jax import lax
from jax.experimental import pallas as pl
from jax.experimental.pallas import tpu as pltpu

EPS = 1e-5  # nn.BatchNorm1d default eps


def fused_block_kernel(x_ref, w1_ref, g1_ref, b1_ref, w2_ref, g2_ref, b2_ref,
                       out_ref, pad_sc, *, N, L, K, pad):
    Cin = x_ref.shape[1]
    Cout = out_ref.shape[1]
    inv_cnt = 1.0 / float(N * L)

    # ---- pad x into the shared VMEM scratch: zero only the halos, write the interior ----
    zeros_halo = jnp.zeros((N, Cin, pad), pad_sc.dtype)
    pad_sc[:, :, :pad] = zeros_halo
    pad_sc[:, :, pad + L:] = zeros_halo
    pad_sc[:, :, pad:pad + L] = x_ref[...].astype(pad_sc.dtype)

    def conv(w_ref):
        # K accumulated (Cout,Cin) x (Cin,L) matmuls per batch; fp32 accumulation.
        w = w_ref[...]                                        # (K, Cout, Cin), loaded once
        accs = []
        for n in range(N):
            xp = pad_sc[n]                                    # (Cin, L + 2*pad)
            acc = jnp.zeros((Cout, L), jnp.float32)
            for k in range(K):
                acc = acc + jnp.dot(w[k], xp[:, k:k + L],
                                    preferred_element_type=jnp.float32)
            accs.append(acc)
        return accs

    def bn_params(accs, g_ref, b_ref):
        # One-pass training-mode BatchNorm1d stats (biased variance), all in fp32.
        s = accs[0].sum(axis=1, keepdims=True)
        ss = (accs[0] * accs[0]).sum(axis=1, keepdims=True)
        for a in accs[1:]:
            s = s + a.sum(axis=1, keepdims=True)
            ss = ss + (a * a).sum(axis=1, keepdims=True)
        mean = s * inv_cnt                                    # (Cout, 1)
        var = jnp.maximum(ss * inv_cnt - mean * mean, 0.0)
        scale = g_ref[...] * lax.rsqrt(var + EPS)
        shift = b_ref[...] - mean * scale
        return scale, shift

    # ---- conv1 -> bn1 -> relu ----
    acc1 = conv(w1_ref)
    scale1, shift1 = bn_params(acc1, g1_ref, b1_ref)

    # ---- re-pad y1 into the SAME scratch (halos still zero; x taps no longer needed) ----
    for n in range(N):
        y1 = jnp.maximum(acc1[n] * scale1 + shift1, 0.0)
        pad_sc[n, :, pad:pad + L] = y1.astype(pad_sc.dtype)

    # ---- conv2 -> bn2 -> +identity -> relu ----
    acc2 = conv(w2_ref)
    scale2, shift2 = bn_params(acc2, g2_ref, b2_ref)
    for n in range(N):
        y2 = acc2[n] * scale2 + shift2
        res = x_ref[n, :, :].astype(jnp.float32)              # downsample=None
        out_ref[n, :, :] = jnp.maximum(y2 + res, 0.0).astype(out_ref.dtype)


@functools.partial(jax.jit, static_argnames=("K", "pad"))
def basic_block_1d(x_ncl, w1, g1, b1, w2, g2, b2, K=9, pad=4):
    """x_ncl: (N, C, L) exactly like the PyTorch Conv1d input; stride=1, same-length output."""
    N, Cin, L = x_ncl.shape
    Cout = w1.shape[0]
    assert 2 * pad == K - 1, "stride=1 'same' conv requires 2*pad == K-1"
    assert Cin == Cout, "downsample=None requires in_channels == out_channels"

    # bf16 inputs feed the MXU in bf16; everything else computes in fp32 (no mixed-dtype dots).
    mat_dtype = jnp.bfloat16 if x_ncl.dtype == jnp.bfloat16 else jnp.float32
    x_in = x_ncl.astype(mat_dtype)

    # PyTorch Conv1d weight (Cout, Cin, K) -> per-tap matrices (K, Cout, Cin)
    w1t = jnp.transpose(w1, (2, 0, 1)).astype(mat_dtype)
    w2t = jnp.transpose(w2, (2, 0, 1)).astype(mat_dtype)
    g1r = g1.reshape(Cout, 1).astype(jnp.float32)
    b1r = b1.reshape(Cout, 1).astype(jnp.float32)
    g2r = g2.reshape(Cout, 1).astype(jnp.float32)
    b2r = b2.reshape(Cout, 1).astype(jnp.float32)

    kernel = functools.partial(fused_block_kernel, N=N, L=L, K=K, pad=pad)
    return pl.pallas_call(
        kernel,
        out_shape=jax.ShapeDtypeStruct((N, Cout, L), x_in.dtype),
        in_specs=[pl.BlockSpec(memory_space=pltpu.MemorySpace.VMEM)] * 7,
        out_specs=pl.BlockSpec(memory_space=pltpu.MemorySpace.VMEM),
        scratch_shapes=[
            # one shared padded-activation buffer, reused by both convs
            pltpu.VMEM((N, Cin, L + 2 * pad), mat_dtype),
        ],
        compiler_params=pltpu.CompilerParams(vmem_limit_bytes=32 * 1024 * 1024),
    )(x_in, w1t, g1r, b1r, w2t, g2r, b2r)


def reference_block(x, w1, g1, b1, w2, g2, b2, pad=4):
    """Pure-JAX reference mirroring the PyTorch forward (training-mode BN)."""
    dn = ("NCH", "OIH", "NCH")

    def conv(z, w):
        return lax.conv_general_dilated(z, w, window_strides=(1,),
                                        padding=[(pad, pad)], dimension_numbers=dn)

    def bn(y, g, b):
        m = jnp.mean(y, axis=(0, 2), keepdims=True)
        v = jnp.mean(jnp.square(y - m), axis=(0, 2), keepdims=True)
        return (y - m) * lax.rsqrt(v + EPS) * g.reshape(1, -1, 1) + b.reshape(1, -1, 1)

    out = jnp.maximum(bn(conv(x, w1), g1, b1), 0.0)
    out = bn(conv(out, w2), g2, b2) + x
    return jnp.maximum(out, 0.0)


if __name__ == "__main__":
    N, C, L, K, PAD = 2, 4, 16, 9, 4  # in_channels == out_channels (downsample=None)
    key = jax.random.PRNGKey(0)
    kx, kw1, kw2, kg1, kb1, kg2, kb2 = jax.random.split(key, 7)

    x = jax.random.normal(kx, (N, C, L), jnp.float32)
    w1 = 0.1 * jax.random.normal(kw1, (C, C, K), jnp.float32)   # Conv1d weight (Cout, Cin, K)
    w2 = 0.1 * jax.random.normal(kw2, (C, C, K), jnp.float32)
    g1 = 1.0 + 0.1 * jax.random.normal(kg1, (C,), jnp.float32)  # bn1 gamma/beta
    b1 = 0.1 * jax.random.normal(kb1, (C,), jnp.float32)
    g2 = 1.0 + 0.1 * jax.random.normal(kg2, (C,), jnp.float32)  # bn2 gamma/beta
    b2 = 0.1 * jax.random.normal(kb2, (C,), jnp.float32)

    out = basic_block_1d(x, w1, g1, b1, w2, g2, b2, K=K, pad=PAD)
    out = jax.block_until_ready(out)

    ref = reference_block(x, w1, g1, b1, w2, g2, b2, pad=PAD)
    assert out.shape == (N, C, L)
    err = float(jnp.max(jnp.abs(out - ref)))
    assert jnp.allclose(out, ref, atol=1e-4, rtol=1e-4), f"max abs err {err}"
    print("KERNEL_OK")
</pallas_src>

<mosaic_0001>
module attributes {stable_mosaic.version = 11 : i64} {
  func.func @fused_block_kernel(%arg0: memref<2x4x16xf32, #tpu.memory_space<vmem>>, %arg1: memref<9x4x4xf32, #tpu.memory_space<vmem>>, %arg2: memref<4x1xf32, #tpu.memory_space<vmem>>, %arg3: memref<4x1xf32, #tpu.memory_space<vmem>>, %arg4: memref<9x4x4xf32, #tpu.memory_space<vmem>>, %arg5: memref<4x1xf32, #tpu.memory_space<vmem>>, %arg6: memref<4x1xf32, #tpu.memory_space<vmem>>, %arg7: memref<2x4x16xf32, #tpu.memory_space<vmem>>, %arg8: memref<2x4x24xf32, #tpu.memory_space<vmem>>) attributes {dimension_semantics = [], scalar_prefetch = 0 : i64, scratch_operands = 1 : i64, tpu.core_type = #tpu.core_type<tc>} {
    %cst = arith.constant 0.000000e+00 : f32
    %0 = vector.broadcast %cst : f32 to vector<2x4x4xf32>
    %c0 = arith.constant 0 : index
    %c0_0 = arith.constant 0 : index
    %c0_1 = arith.constant 0 : index
    %1 = vector.load %arg8[%c0, %c0_0, %c0_1] : memref<2x4x24xf32, #tpu.memory_space<vmem>>, vector<2x4x4xf32>
    tpu.vector_store %arg8[%c0, %c0_0, %c0_1], %0 {strides = array<i32>} : memref<2x4x24xf32, #tpu.memory_space<vmem>>, vector<2x4x4xf32>,
    %c0_2 = arith.constant 0 : index
    %c0_3 = arith.constant 0 : index
    %c20 = arith.constant 20 : index
    %2 = vector.load %arg8[%c0_2, %c0_3, %c20] : memref<2x4x24xf32, #tpu.memory_space<vmem>>, vector<2x4x4xf32>
    tpu.vector_store %arg8[%c0_2, %c0_3, %c20], %0 {strides = array<i32>} : memref<2x4x24xf32, #tpu.memory_space<vmem>>, vector<2x4x4xf32>,
    %c0_4 = arith.constant 0 : index
    %c0_5 = arith.constant 0 : index
    %c0_6 = arith.constant 0 : index
    %3 = vector.load %arg0[%c0_4, %c0_5, %c0_6] : memref<2x4x16xf32, #tpu.memory_space<vmem>>, vector<2x4x16xf32>
    %c0_7 = arith.constant 0 : index
    %c0_8 = arith.constant 0 : index
    %c4 = arith.constant 4 : index
    %4 = vector.load %arg8[%c0_7, %c0_8, %c4] : memref<2x4x24xf32, #tpu.memory_space<vmem>>, vector<2x4x16xf32>
    tpu.vector_store %arg8[%c0_7, %c0_8, %c4], %3 {strides = array<i32>} : memref<2x4x24xf32, #tpu.memory_space<vmem>>, vector<2x4x16xf32>,
    %c0_9 = arith.constant 0 : index
    %c0_10 = arith.constant 0 : index
    %c0_11 = arith.constant 0 : index
    %5 = vector.load %arg1[%c0_9, %c0_10, %c0_11] : memref<9x4x4xf32, #tpu.memory_space<vmem>>, vector<9x4x4xf32>
    %c0_12 = arith.constant 0 : index
    %c0_13 = arith.constant 0 : index
    %c0_14 = arith.constant 0 : index
    %6 = vector.load %arg8[%c0_12, %c0_13, %c0_14] : memref<2x4x24xf32, #tpu.memory_space<vmem>>, vector<1x4x24xf32>
    %7 = vector.shape_cast %6 : vector<1x4x24xf32> to vector<4x24xf32>
    %cst_15 = arith.constant 0.000000e+00 : f32
    %8 = vector.broadcast %cst_15 : f32 to vector<4x16xf32>
    %9 = vector.extract_strided_slice %5 {offsets = [0, 0, 0], sizes = [1, 4, 4], strides = [1, 1, 1]} : vector<9x4x4xf32> to vector<1x4x4xf32>
    %10 = vector.shape_cast %9 : vector<1x4x4xf32> to vector<4x4xf32>
    %11 = vector.extract_strided_slice %7 {offsets = [0, 0], sizes = [4, 16], strides = [1, 1]} : vector<4x24xf32> to vector<4x16xf32>
    %cst_16 = arith.constant dense<0.000000e+00> : vector<4x16xf32>
    %12 = tpu.matmul %10, %11, %cst_16 {dimension_numbers = #tpu.dot_dimension_numbers<[1], [0], [0], [1], [0, 0, 1, 1], [], []>} : vector<4x4xf32>, vector<4x16xf32>, vector<4x16xf32> -> vector<4x16xf32>
    %13 = arith.addf %8, %12 : vector<4x16xf32>
    %14 = vector.extract_strided_slice %5 {offsets = [1, 0, 0], sizes = [1, 4, 4], strides = [1, 1, 1]} : vector<9x4x4xf32> to vector<1x4x4xf32>
    %15 = vector.shape_cast %14 : vector<1x4x4xf32> to vector<4x4xf32>
    %16 = vector.extract_strided_slice %7 {offsets = [0, 1], sizes = [4, 16], strides = [1, 1]} : vector<4x24xf32> to vector<4x16xf32>
    %cst_17 = arith.constant dense<0.000000e+00> : vector<4x16xf32>
    %17 = tpu.matmul %15, %16, %cst_17 {dimension_numbers = #tpu.dot_dimension_numbers<[1], [0], [0], [1], [0, 0, 1, 1], [], []>} : vector<4x4xf32>, vector<4x16xf32>, vector<4x16xf32> -> vector<4x16xf32>
    %18 = arith.addf %13, %17 : vector<4x16xf32>
    %19 = vector.extract_strided_slice %5 {offsets = [2, 0, 0], sizes = [1, 4, 4], strides = [1, 1, 1]} : vector<9x4x4xf32> to vector<1x4x4xf32>
    %20 = vector.shape_cast %19 : vector<1x4x4xf32> to vector<4x4xf32>
    %21 = vector.extract_strided_slice %7 {offsets = [0, 2], sizes = [4, 16], strides = [1, 1]} : vector<4x24xf32> to vector<4x16xf32>
    %cst_18 = arith.constant dense<0.000000e+00> : vector<4x16xf32>
    %22 = tpu.matmul %20, %21, %cst_18 {dimension_numbers = #tpu.dot_dimension_numbers<[1], [0], [0], [1], [0, 0, 1, 1], [], []>} : vector<4x4xf32>, vector<4x16xf32>, vector<4x16xf32> -> vector<4x16xf32>
    %23 = arith.addf %18, %22 : vector<4x16xf32>
    %24 = vector.extract_strided_slice %5 {offsets = [3, 0, 0], sizes = [1, 4, 4], strides = [1, 1, 1]} : vector<9x4x4xf32> to vector<1x4x4xf32>
    %25 = vector.shape_cast %24 : vector<1x4x4xf32> to vector<4x4xf32>
    %26 = vector.extract_strided_slice %7 {offsets = [0, 3], sizes = [4, 16], strides = [1, 1]} : vector<4x24xf32> to vector<4x16xf32>
    %cst_19 = arith.constant dense<0.000000e+00> : vector<4x16xf32>
    %27 = tpu.matmul %25, %26, %cst_19 {dimension_numbers = #tpu.dot_dimension_numbers<[1], [0], [0], [1], [0, 0, 1, 1], [], []>} : vector<4x4xf32>, vector<4x16xf32>, vector<4x16xf32> -> vector<4x16xf32>
    %28 = arith.addf %23, %27 : vector<4x16xf32>
    %29 = vector.extract_strided_slice %5 {offsets = [4, 0, 0], sizes = [1, 4, 4], strides = [1, 1, 1]} : vector<9x4x4xf32> to vector<1x4x4xf32>
    %30 = vector.shape_cast %29 : vector<1x4x4xf32> to vector<4x4xf32>
    %31 = vector.extract_strided_slice %7 {offsets = [0, 4], sizes = [4, 16], strides = [1, 1]} : vector<4x24xf32> to vector<4x16xf32>
    %cst_20 = arith.constant dense<0.000000e+00> : vector<4x16xf32>
    %32 = tpu.matmul %30, %31, %cst_20 {dimension_numbers = #tpu.dot_dimension_numbers<[1], [0], [0], [1], [0, 0, 1, 1], [], []>} : vector<4x4xf32>, vector<4x16xf32>, vector<4x16xf32> -> vector<4x16xf32>
    %33 = arith.addf %28, %32 : vector<4x16xf32>
    %34 = vector.extract_strided_slice %5 {offsets = [5, 0, 0], sizes = [1, 4, 4], strides = [1, 1, 1]} : vector<9x4x4xf32> to vector<1x4x4xf32>
    %35 = vector.shape_cast %34 : vector<1x4x4xf32> to vector<4x4xf32>
    %36 = vector.extract_strided_slice %7 {offsets = [0, 5], sizes = [4, 16], strides = [1, 1]} : vector<4x24xf32> to vector<4x16xf32>
    %cst_21 = arith.constant dense<0.000000e+00> : vector<4x16xf32>
    %37 = tpu.matmul %35, %36, %cst_21 {dimension_numbers = #tpu.dot_dimension_numbers<[1], [0], [0], [1], [0, 0, 1, 1], [], []>} : vector<4x4xf32>, vector<4x16xf32>, vector<4x16xf32> -> vector<4x16xf32>
    %38 = arith.addf %33, %37 : vector<4x16xf32>
    %39 = vector.extract_strided_slice %5 {offsets = [6, 0, 0], sizes = [1, 4, 4], strides = [1, 1, 1]} : vector<9x4x4xf32> to vector<1x4x4xf32>
    %40 = vector.shape_cast %39 : vector<1x4x4xf32> to vector<4x4xf32>
    %41 = vector.extract_strided_slice %7 {offsets = [0, 6], sizes = [4, 16], strides = [1, 1]} : vector<4x24xf32> to vector<4x16xf32>
    %cst_22 = arith.constant dense<0.000000e+00> : vector<4x16xf32>
    %42 = tpu.matmul %40, %41, %cst_22 {dimension_numbers = #tpu.dot_dimension_numbers<[1], [0], [0], [1], [0, 0, 1, 1], [], []>} : vector<4x4xf32>, vector<4x16xf32>, vector<4x16xf32> -> vector<4x16xf32>
    %43 = arith.addf %38, %42 : vector<4x16xf32>
    %44 = vector.extract_strided_slice %5 {offsets = [7, 0, 0], sizes = [1, 4, 4], strides = [1, 1, 1]} : vector<9x4x4xf32> to vector<1x4x4xf32>
    %45 = vector.shape_cast %44 : vector<1x4x4xf32> to vector<4x4xf32>
    %46 = vector.extract_strided_slice %7 {offsets = [0, 7], sizes = [4, 16], strides = [1, 1]} : vector<4x24xf32> to vector<4x16xf32>
    %cst_23 = arith.constant dense<0.000000e+00> : vector<4x16xf32>
    %47 = tpu.matmul %45, %46, %cst_23 {dimension_numbers = #tpu.dot_dimension_numbers<[1], [0], [0], [1], [0, 0, 1, 1], [], []>} : vector<4x4xf32>, vector<4x16xf32>, vector<4x16xf32> -> vector<4x16xf32>
    %48 = arith.addf %43, %47 : vector<4x16xf32>
    %49 = vector.extract_strided_slice %5 {offsets = [8, 0, 0], sizes = [1, 4, 4], strides = [1, 1, 1]} : vector<9x4x4xf32> to vector<1x4x4xf32>
    %50 = vector.shape_cast %49 : vector<1x4x4xf32> to vector<4x4xf32>
    %51 = vector.extract_strided_slice %7 {offsets = [0, 8], sizes = [4, 16], strides = [1, 1]} : vector<4x24xf32> to vector<4x16xf32>
    %cst_24 = arith.constant dense<0.000000e+00> : vector<4x16xf32>
    %52 = tpu.matmul %50, %51, %cst_24 {dimension_numbers = #tpu.dot_dimension_numbers<[1], [0], [0], [1], [0, 0, 1, 1], [], []>} : vector<4x4xf32>, vector<4x16xf32>, vector<4x16xf32> -> vector<4x16xf32>
    %53 = arith.addf %48, %52 : vector<4x16xf32>
    %c1 = arith.constant 1 : index
    %c0_25 = arith.constant 0 : index
    %c0_26 = arith.constant 0 : index
    %54 = vector.load %arg8[%c1, %c0_25, %c0_26] : memref<2x4x24xf32, #tpu.memory_space<vmem>>, vector<1x4x24xf32>
    %55 = vector.shape_cast %54 : vector<1x4x24xf32> to vector<4x24xf32>
    %cst_27 = arith.constant 0.000000e+00 : f32
    %56 = vector.broadcast %cst_27 : f32 to vector<4x16xf32>
    %57 = vector.extract_strided_slice %5 {offsets = [0, 0, 0], sizes = [1, 4, 4], strides = [1, 1, 1]} : vector<9x4x4xf32> to vector<1x4x4xf32>
    %58 = vector.shape_cast %57 : vector<1x4x4xf32> to vector<4x4xf32>
    %59 = vector.extract_strided_slice %55 {offsets = [0, 0], sizes = [4, 16], strides = [1, 1]} : vector<4x24xf32> to vector<4x16xf32>
    %cst_28 = arith.constant dense<0.000000e+00> : vector<4x16xf32>
    %60 = tpu.matmul %58, %59, %cst_28 {dimension_numbers = #tpu.dot_dimension_numbers<[1], [0], [0], [1], [0, 0, 1, 1], [], []>} : vector<4x4xf32>, vector<4x16xf32>, vector<4x16xf32> -> vector<4x16xf32>
    %61 = arith.addf %56, %60 : vector<4x16xf32>
    %62 = vector.extract_strided_slice %5 {offsets = [1, 0, 0], sizes = [1, 4, 4], strides = [1, 1, 1]} : vector<9x4x4xf32> to vector<1x4x4xf32>
    %63 = vector.shape_cast %62 : vector<1x4x4xf32> to vector<4x4xf32>
    %64 = vector.extract_strided_slice %55 {offsets = [0, 1], sizes = [4, 16], strides = [1, 1]} : vector<4x24xf32> to vector<4x16xf32>
    %cst_29 = arith.constant dense<0.000000e+00> : vector<4x16xf32>
    %65 = tpu.matmul %63, %64, %cst_29 {dimension_numbers = #tpu.dot_dimension_numbers<[1], [0], [0], [1], [0, 0, 1, 1], [], []>} : vector<4x4xf32>, vector<4x16xf32>, vector<4x16xf32> -> vector<4x16xf32>
    %66 = arith.addf %61, %65 : vector<4x16xf32>
    %67 = vector.extract_strided_slice %5 {offsets = [2, 0, 0], sizes = [1, 4, 4], strides = [1, 1, 1]} : vector<9x4x4xf32> to vector<1x4x4xf32>
    %68 = vector.shape_cast %67 : vector<1x4x4xf32> to vector<4x4xf32>
    %69 = vector.extract_strided_slice %55 {offsets = [0, 2], sizes = [4, 16], strides = [1, 1]} : vector<4x24xf32> to vector<4x16xf32>
    %cst_30 = arith.constant dense<0.000000e+00> : vector<4x16xf32>
    %70 = tpu.matmul %68, %69, %cst_30 {dimension_numbers = #tpu.dot_dimension_numbers<[1], [0], [0], [1], [0, 0, 1, 1], [], []>} : vector<4x4xf32>, vector<4x16xf32>, vector<4x16xf32> -> vector<4x16xf32>
    %71 = arith.addf %66, %70 : vector<4x16xf32>
    %72 = vector.extract_strided_slice %5 {offsets = [3, 0, 0], sizes = [1, 4, 4], strides = [1, 1, 1]} : vector<9x4x4xf32> to vector<1x4x4xf32>
    %73 = vector.shape_cast %72 : vector<1x4x4xf32> to vector<4x4xf32>
    %74 = vector.extract_strided_slice %55 {offsets = [0, 3], sizes = [4, 16], strides = [1, 1]} : vector<4x24xf32> to vector<4x16xf32>
    %cst_31 = arith.constant dense<0.000000e+00> : vector<4x16xf32>
    %75 = tpu.matmul %73, %74, %cst_31 {dimension_numbers = #tpu.dot_dimension_numbers<[1], [0], [0], [1], [0, 0, 1, 1], [], []>} : vector<4x4xf32>, vector<4x16xf32>, vector<4x16xf32> -> vector<4x16xf32>
    %76 = arith.addf %71, %75 : vector<4x16xf32>
    %77 = vector.extract_strided_slice %5 {offsets = [4, 0, 0], sizes = [1, 4, 4], strides = [1, 1, 1]} : vector<9x4x4xf32> to vector<1x4x4xf32>
    %78 = vector.shape_cast %77 : vector<1x4x4xf32> to vector<4x4xf32>
    %79 = vector.extract_strided_slice %55 {offsets = [0, 4], sizes = [4, 16], strides = [1, 1]} : vector<4x24xf32> to vector<4x16xf32>
    %cst_32 = arith.constant dense<0.000000e+00> : vector<4x16xf32>
    %80 = tpu.matmul %78, %79, %cst_32 {dimension_numbers = #tpu.dot_dimension_numbers<[1], [0], [0], [1], [0, 0, 1, 1], [], []>} : vector<4x4xf32>, vector<4x16xf32>, vector<4x16xf32> -> vector<4x16xf32>
    %81 = arith.addf %76, %80 : vector<4x16xf32>
    %82 = vector.extract_strided_slice %5 {offsets = [5, 0, 0], sizes = [1, 4, 4], strides = [1, 1, 1]} : vector<9x4x4xf32> to vector<1x4x4xf32>
    %83 = vector.shape_cast %82 : vector<1x4x4xf32> to vector<4x4xf32>
    %84 = vector.extract_strided_slice %55 {offsets = [0, 5], sizes = [4, 16], strides = [1, 1]} : vector<4x24xf32> to vector<4x16xf32>
    %cst_33 = arith.constant dense<0.000000e+00> : vector<4x16xf32>
    %85 = tpu.matmul %83, %84, %cst_33 {dimension_numbers = #tpu.dot_dimension_numbers<[1], [0], [0], [1], [0, 0, 1, 1], [], []>} : vector<4x4xf32>, vector<4x16xf32>, vector<4x16xf32> -> vector<4x16xf32>
    %86 = arith.addf %81, %85 : vector<4x16xf32>
    %87 = vector.extract_strided_slice %5 {offsets = [6, 0, 0], sizes = [1, 4, 4], strides = [1, 1, 1]} : vector<9x4x4xf32> to vector<1x4x4xf32>
    %88 = vector.shape_cast %87 : vector<1x4x4xf32> to vector<4x4xf32>
    %89 = vector.extract_strided_slice %55 {offsets = [0, 6], sizes = [4, 16], strides = [1, 1]} : vector<4x24xf32> to vector<4x16xf32>
    %cst_34 = arith.constant dense<0.000000e+00> : vector<4x16xf32>
    %90 = tpu.matmul %88, %89, %cst_34 {dimension_numbers = #tpu.dot_dimension_numbers<[1], [0], [0], [1], [0, 0, 1, 1], [], []>} : vector<4x4xf32>, vector<4x16xf32>, vector<4x16xf32> -> vector<4x16xf32>
    %91 = arith.addf %86, %90 : vector<4x16xf32>
    %92 = vector.extract_strided_slice %5 {offsets = [7, 0, 0], sizes = [1, 4, 4], strides = [1, 1, 1]} : vector<9x4x4xf32> to vector<1x4x4xf32>
    %93 = vector.shape_cast %92 : vector<1x4x4xf32> to vector<4x4xf32>
    %94 = vector.extract_strided_slice %55 {offsets = [0, 7], sizes = [4, 16], strides = [1, 1]} : vector<4x24xf32> to vector<4x16xf32>
    %cst_35 = arith.constant dense<0.000000e+00> : vector<4x16xf32>
    %95 = tpu.matmul %93, %94, %cst_35 {dimension_numbers = #tpu.dot_dimension_numbers<[1], [0], [0], [1], [0, 0, 1, 1], [], []>} : vector<4x4xf32>, vector<4x16xf32>, vector<4x16xf32> -> vector<4x16xf32>
    %96 = arith.addf %91, %95 : vector<4x16xf32>
    %97 = vector.extract_strided_slice %5 {offsets = [8, 0, 0], sizes = [1, 4, 4], strides = [1, 1, 1]} : vector<9x4x4xf32> to vector<1x4x4xf32>
    %98 = vector.shape_cast %97 : vector<1x4x4xf32> to vector<4x4xf32>
    %99 = vector.extract_strided_slice %55 {offsets = [0, 8], sizes = [4, 16], strides = [1, 1]} : vector<4x24xf32> to vector<4x16xf32>
    %cst_36 = arith.constant dense<0.000000e+00> : vector<4x16xf32>
    %100 = tpu.matmul %98, %99, %cst_36 {dimension_numbers = #tpu.dot_dimension_numbers<[1], [0], [0], [1], [0, 0, 1, 1], [], []>} : vector<4x4xf32>, vector<4x16xf32>, vector<4x16xf32> -> vector<4x16xf32>
    %101 = arith.addf %96, %100 : vector<4x16xf32>
    %cst_37 = arith.constant dense<0.000000e+00> : vector<4xf32>
    %102 = vector.multi_reduction <add>, %53, %cst_37 [1] : vector<4x16xf32> to vector<4xf32>
    %103 = vector.shape_cast %102 : vector<4xf32> to vector<4x1xf32>
    %104 = arith.mulf %53, %53 : vector<4x16xf32>
    %cst_38 = arith.constant dense<0.000000e+00> : vector<4xf32>
    %105 = vector.multi_reduction <add>, %104, %cst_38 [1] : vector<4x16xf32> to vector<4xf32>
    %106 = vector.shape_cast %105 : vector<4xf32> to vector<4x1xf32>
    %cst_39 = arith.constant dense<0.000000e+00> : vector<4xf32>
    %107 = vector.multi_reduction <add>, %101, %cst_39 [1] : vector<4x16xf32> to vector<4xf32>
    %108 = vector.shape_cast %107 : vector<4xf32> to vector<4x1xf32>
    %109 = arith.addf %103, %108 : vector<4x1xf32>
    %110 = arith.mulf %101, %101 : vector<4x16xf32>
    %cst_40 = arith.constant dense<0.000000e+00> : vector<4xf32>
    %111 = vector.multi_reduction <add>, %110, %cst_40 [1] : vector<4x16xf32> to vector<4xf32>
    %112 = vector.shape_cast %111 : vector<4xf32> to vector<4x1xf32>
    %113 = arith.addf %106, %112 : vector<4x1xf32>
    %cst_41 = arith.constant 3.125000e-02 : f32
    %114 = vector.broadcast %cst_41 : f32 to vector<4x1xf32>
    %115 = arith.mulf %109, %114 : vector<4x1xf32>
    %cst_42 = arith.constant 3.125000e-02 : f32
    %116 = vector.broadcast %cst_42 : f32 to vector<4x1xf32>
    %117 = arith.mulf %113, %116 : vector<4x1xf32>
    %118 = arith.mulf %115, %115 : vector<4x1xf32>
    %119 = arith.subf %117, %118 : vector<4x1xf32>
    %cst_43 = arith.constant 0.000000e+00 : f32
    %120 = vector.broadcast %cst_43 : f32 to vector<4x1xf32>
    %121 = arith.maximumf %119, %120 : vector<4x1xf32>
    %c0_44 = arith.constant 0 : index
    %c0_45 = arith.constant 0 : index
    %122 = vector.load %arg2[%c0_44, %c0_45] : memref<4x1xf32, #tpu.memory_space<vmem>>, vector<4x1xf32>
    %cst_46 = arith.constant 9.99999974E-6 : f32
    %123 = vector.broadcast %cst_46 : f32 to vector<4x1xf32>
    %124 = arith.addf %121, %123 : vector<4x1xf32>
    %125 = math.rsqrt %124 : vector<4x1xf32>
    %126 = arith.mulf %122, %125 : vector<4x1xf32>
    %c0_47 = arith.constant 0 : index
    %c0_48 = arith.constant 0 : index
    %127 = vector.load %arg3[%c0_47, %c0_48] : memref<4x1xf32, #tpu.memory_space<vmem>>, vector<4x1xf32>
    %128 = arith.mulf %115, %126 : vector<4x1xf32>
    %129 = arith.subf %127, %128 : vector<4x1xf32>
    %130 = vector.broadcast %126 : vector<4x1xf32> to vector<4x16xf32>
    %131 = arith.mulf %53, %130 : vector<4x16xf32>
    %132 = vector.broadcast %129 : vector<4x1xf32> to vector<4x16xf32>
    %133 = arith.addf %131, %132 : vector<4x16xf32>
    %cst_49 = arith.constant 0.000000e+00 : f32
    %134 = vector.broadcast %cst_49 : f32 to vector<4x16xf32>
    %135 = arith.maximumf %133, %134 : vector<4x16xf32>
    %c0_50 = arith.constant 0 : index
    %c0_51 = arith.constant 0 : index
    %c4_52 = arith.constant 4 : index
    %136 = vector.load %arg8[%c0_50, %c0_51, %c4_52] : memref<2x4x24xf32, #tpu.memory_space<vmem>>, vector<1x4x16xf32>
    %137 = vector.shape_cast %136 : vector<1x4x16xf32> to vector<4x16xf32>
    %138 = vector.shape_cast %135 : vector<4x16xf32> to vector<1x4x16xf32>
    tpu.vector_store %arg8[%c0_50, %c0_51, %c4_52], %138 {strides = array<i32>} : memref<2x4x24xf32, #tpu.memory_space<vmem>>, vector<1x4x16xf32>,
    %139 = vector.broadcast %126 : vector<4x1xf32> to vector<4x16xf32>
    %140 = arith.mulf %101, %139 : vector<4x16xf32>
    %141 = vector.broadcast %129 : vector<4x1xf32> to vector<4x16xf32>
    %142 = arith.addf %140, %141 : vector<4x16xf32>
    %cst_53 = arith.constant 0.000000e+00 : f32
    %143 = vector.broadcast %cst_53 : f32 to vector<4x16xf32>
    %144 = arith.maximumf %142, %143 : vector<4x16xf32>
    %c1_54 = arith.constant 1 : index
    %c0_55 = arith.constant 0 : index
    %c4_56 = arith.constant 4 : index
    %145 = vector.load %arg8[%c1_54, %c0_55, %c4_56] : memref<2x4x24xf32, #tpu.memory_space<vmem>>, vector<1x4x16xf32>
    %146 = vector.shape_cast %145 : vector<1x4x16xf32> to vector<4x16xf32>
    %147 = vector.shape_cast %144 : vector<4x16xf32> to vector<1x4x16xf32>
    tpu.vector_store %arg8[%c1_54, %c0_55, %c4_56], %147 {strides = array<i32>} : memref<2x4x24xf32, #tpu.memory_space<vmem>>, vector<1x4x16xf32>,
    %c0_57 = arith.constant 0 : index
    %c0_58 = arith.constant 0 : index
    %c0_59 = arith.constant 0 : index
    %148 = vector.load %arg4[%c0_57, %c0_58, %c0_59] : memref<9x4x4xf32, #tpu.memory_space<vmem>>, vector<9x4x4xf32>
    %c0_60 = arith.constant 0 : index
    %c0_61 = arith.constant 0 : index
    %c0_62 = arith.constant 0 : index
    %149 = vector.load %arg8[%c0_60, %c0_61, %c0_62] : memref<2x4x24xf32, #tpu.memory_space<vmem>>, vector<1x4x24xf32>
    %150 = vector.shape_cast %149 : vector<1x4x24xf32> to vector<4x24xf32>
    %cst_63 = arith.constant 0.000000e+00 : f32
    %151 = vector.broadcast %cst_63 : f32 to vector<4x16xf32>
    %152 = vector.extract_strided_slice %148 {offsets = [0, 0, 0], sizes = [1, 4, 4], strides = [1, 1, 1]} : vector<9x4x4xf32> to vector<1x4x4xf32>
    %153 = vector.shape_cast %152 : vector<1x4x4xf32> to vector<4x4xf32>
    %154 = vector.extract_strided_slice %150 {offsets = [0, 0], sizes = [4, 16], strides = [1, 1]} : vector<4x24xf32> to vector<4x16xf32>
    %cst_64 = arith.constant dense<0.000000e+00> : vector<4x16xf32>
    %155 = tpu.matmul %153, %154, %cst_64 {dimension_numbers = #tpu.dot_dimension_numbers<[1], [0], [0], [1], [0, 0, 1, 1], [], []>} : vector<4x4xf32>, vector<4x16xf32>, vector<4x16xf32> -> vector<4x16xf32>
    %156 = arith.addf %151, %155 : vector<4x16xf32>
    %157 = vector.extract_strided_slice %148 {offsets = [1, 0, 0], sizes = [1, 4, 4], strides = [1, 1, 1]} : vector<9x4x4xf32> to vector<1x4x4xf32>
    %158 = vector.shape_cast %157 : vector<1x4x4xf32> to vector<4x4xf32>
    %159 = vector.extract_strided_slice %150 {offsets = [0, 1], sizes = [4, 16], strides = [1, 1]} : vector<4x24xf32> to vector<4x16xf32>
    %cst_65 = arith.constant dense<0.000000e+00> : vector<4x16xf32>
    %160 = tpu.matmul %158, %159, %cst_65 {dimension_numbers = #tpu.dot_dimension_numbers<[1], [0], [0], [1], [0, 0, 1, 1], [], []>} : vector<4x4xf32>, vector<4x16xf32>, vector<4x16xf32> -> vector<4x16xf32>
    %161 = arith.addf %156, %160 : vector<4x16xf32>
    %162 = vector.extract_strided_slice %148 {offsets = [2, 0, 0], sizes = [1, 4, 4], strides = [1, 1, 1]} : vector<9x4x4xf32> to vector<1x4x4xf32>
    %163 = vector.shape_cast %162 : vector<1x4x4xf32> to vector<4x4xf32>
    %164 = vector.extract_strided_slice %150 {offsets = [0, 2], sizes = [4, 16], strides = [1, 1]} : vector<4x24xf32> to vector<4x16xf32>
    %cst_66 = arith.constant dense<0.000000e+00> : vector<4x16xf32>
    %165 = tpu.matmul %163, %164, %cst_66 {dimension_numbers = #tpu.dot_dimension_numbers<[1], [0], [0], [1], [0, 0, 1, 1], [], []>} : vector<4x4xf32>, vector<4x16xf32>, vector<4x16xf32> -> vector<4x16xf32>
    %166 = arith.addf %161, %165 : vector<4x16xf32>
    %167 = vector.extract_strided_slice %148 {offsets = [3, 0, 0], sizes = [1, 4, 4], strides = [1, 1, 1]} : vector<9x4x4xf32> to vector<1x4x4xf32>
    %168 = vector.shape_cast %167 : vector<1x4x4xf32> to vector<4x4xf32>
    %169 = vector.extract_strided_slice %150 {offsets = [0, 3], sizes = [4, 16], strides = [1, 1]} : vector<4x24xf32> to vector<4x16xf32>
    %cst_67 = arith.constant dense<0.000000e+00> : vector<4x16xf32>
    %170 = tpu.matmul %168, %169, %cst_67 {dimension_numbers = #tpu.dot_dimension_numbers<[1], [0], [0], [1], [0, 0, 1, 1], [], []>} : vector<4x4xf32>, vector<4x16xf32>, vector<4x16xf32> -> vector<4x16xf32>
    %171 = arith.addf %166, %170 : vector<4x16xf32>
    %172 = vector.extract_strided_slice %148 {offsets = [4, 0, 0], sizes = [1, 4, 4], strides = [1, 1, 1]} : vector<9x4x4xf32> to vector<1x4x4xf32>
    %173 = vector.shape_cast %172 : vector<1x4x4xf32> to vector<4x4xf32>
    %174 = vector.extract_strided_slice %150 {offsets = [0, 4], sizes = [4, 16], strides = [1, 1]} : vector<4x24xf32> to vector<4x16xf32>
    %cst_68 = arith.constant dense<0.000000e+00> : vector<4x16xf32>
    %175 = tpu.matmul %173, %174, %cst_68 {dimension_numbers = #tpu.dot_dimension_numbers<[1], [0], [0], [1], [0, 0, 1, 1], [], []>} : vector<4x4xf32>, vector<4x16xf32>, vector<4x16xf32> -> vector<4x16xf32>
    %176 = arith.addf %171, %175 : vector<4x16xf32>
    %177 = vector.extract_strided_slice %148 {offsets = [5, 0, 0], sizes = [1, 4, 4], strides = [1, 1, 1]} : vector<9x4x4xf32> to vector<1x4x4xf32>
    %178 = vector.shape_cast %177 : vector<1x4x4xf32> to vector<4x4xf32>
    %179 = vector.extract_strided_slice %150 {offsets = [0, 5], sizes = [4, 16], strides = [1, 1]} : vector<4x24xf32> to vector<4x16xf32>
    %cst_69 = arith.constant dense<0.000000e+00> : vector<4x16xf32>
    %180 = tpu.matmul %178, %179, %cst_69 {dimension_numbers = #tpu.dot_dimension_numbers<[1], [0], [0], [1], [0, 0, 1, 1], [], []>} : vector<4x4xf32>, vector<4x16xf32>, vector<4x16xf32> -> vector<4x16xf32>
    %181 = arith.addf %176, %180 : vector<4x16xf32>
    %182 = vector.extract_strided_slice %148 {offsets = [6, 0, 0], sizes = [1, 4, 4], strides = [1, 1, 1]} : vector<9x4x4xf32> to vector<1x4x4xf32>
    %183 = vector.shape_cast %182 : vector<1x4x4xf32> to vector<4x4xf32>
    %184 = vector.extract_strided_slice %150 {offsets = [0, 6], sizes = [4, 16], strides = [1, 1]} : vector<4x24xf32> to vector<4x16xf32>
    %cst_70 = arith.constant dense<0.000000e+00> : vector<4x16xf32>
    %185 = tpu.matmul %183, %184, %cst_70 {dimension_numbers = #tpu.dot_dimension_numbers<[1], [0], [0], [1], [0, 0, 1, 1], [], []>} : vector<4x4xf32>, vector<4x16xf32>, vector<4x16xf32> -> vector<4x16xf32>
    %186 = arith.addf %181, %185 : vector<4x16xf32>
    %187 = vector.extract_strided_slice %148 {offsets = [7, 0, 0], sizes = [1, 4, 4], strides = [1, 1, 1]} : vector<9x4x4xf32> to vector<1x4x4xf32>
    %188 = vector.shape_cast %187 : vector<1x4x4xf32> to vector<4x4xf32>
    %189 = vector.extract_strided_slice %150 {offsets = [0, 7], sizes = [4, 16], strides = [1, 1]} : vector<4x24xf32> to vector<4x16xf32>
    %cst_71 = arith.constant dense<0.000000e+00> : vector<4x16xf32>
    %190 = tpu.matmul %188, %189, %cst_71 {dimension_numbers = #tpu.dot_dimension_numbers<[1], [0], [0], [1], [0, 0, 1, 1], [], []>} : vector<4x4xf32>, vector<4x16xf32>, vector<4x16xf32> -> vector<4x16xf32>
    %191 = arith.addf %186, %190 : vector<4x16xf32>
    %192 = vector.extract_strided_slice %148 {offsets = [8, 0, 0], sizes = [1, 4, 4], strides = [1, 1, 1]} : vector<9x4x4xf32> to vector<1x4x4xf32>
    %193 = vector.shape_cast %192 : vector<1x4x4xf32> to vector<4x4xf32>
    %194 = vector.extract_strided_slice %150 {offsets = [0, 8], sizes = [4, 16], strides = [1, 1]} : vector<4x24xf32> to vector<4x16xf32>
    %cst_72 = arith.constant dense<0.000000e+00> : vector<4x16xf32>
    %195 = tpu.matmul %193, %194, %cst_72 {dimension_numbers = #tpu.dot_dimension_numbers<[1], [0], [0], [1], [0, 0, 1, 1], [], []>} : vector<4x4xf32>, vector<4x16xf32>, vector<4x16xf32> -> vector<4x16xf32>
    %196 = arith.addf %191, %195 : vector<4x16xf32>
    %c1_73 = arith.constant 1 : index
    %c0_74 = arith.constant 0 : index
    %c0_75 = arith.constant 0 : index
    %197 = vector.load %arg8[%c1_73, %c0_74, %c0_75] : memref<2x4x24xf32, #tpu.memory_space<vmem>>, vector<1x4x24xf32>
    %198 = vector.shape_cast %197 : vector<1x4x24xf32> to vector<4x24xf32>
    %cst_76 = arith.constant 0.000000e+00 : f32
    %199 = vector.broadcast %cst_76 : f32 to vector<4x16xf32>
    %200 = vector.extract_strided_slice %148 {offsets = [0, 0, 0], sizes = [1, 4, 4], strides = [1, 1, 1]} : vector<9x4x4xf32> to vector<1x4x4xf32>
    %201 = vector.shape_cast %200 : vector<1x4x4xf32> to vector<4x4xf32>
    %202 = vector.extract_strided_slice %198 {offsets = [0, 0], sizes = [4, 16], strides = [1, 1]} : vector<4x24xf32> to vector<4x16xf32>
    %cst_77 = arith.constant dense<0.000000e+00> : vector<4x16xf32>
    %203 = tpu.matmul %201, %202, %cst_77 {dimension_numbers = #tpu.dot_dimension_numbers<[1], [0], [0], [1], [0, 0, 1, 1], [], []>} : vector<4x4xf32>, vector<4x16xf32>, vector<4x16xf32> -> vector<4x16xf32>
    %204 = arith.addf %199, %203 : vector<4x16xf32>
    %205 = vector.extract_strided_slice %148 {offsets = [1, 0, 0], sizes = [1, 4, 4], strides = [1, 1, 1]} : vector<9x4x4xf32> to vector<1x4x4xf32>
    %206 = vector.shape_cast %205 : vector<1x4x4xf32> to vector<4x4xf32>
    %207 = vector.extract_strided_slice %198 {offsets = [0, 1], sizes = [4, 16], strides = [1, 1]} : vector<4x24xf32> to vector<4x16xf32>
    %cst_78 = arith.constant dense<0.000000e+00> : vector<4x16xf32>
    %208 = tpu.matmul %206, %207, %cst_78 {dimension_numbers = #tpu.dot_dimension_numbers<[1], [0], [0], [1], [0, 0, 1, 1], [], []>} : vector<4x4xf32>, vector<4x16xf32>, vector<4x16xf32> -> vector<4x16xf32>
    %209 = arith.addf %204, %208 : vector<4x16xf32>
    %210 = vector.extract_strided_slice %148 {offsets = [2, 0, 0], sizes = [1, 4, 4], strides = [1, 1, 1]} : vector<9x4x4xf32> to vector<1x4x4xf32>
    %211 = vector.shape_cast %210 : vector<1x4x4xf32> to vector<4x4xf32>
    %212 = vector.extract_strided_slice %198 {offsets = [0, 2], sizes = [4, 16], strides = [1, 1]} : vector<4x24xf32> to vector<4x16xf32>
    %cst_79 = arith.constant dense<0.000000e+00> : vector<4x16xf32>
    %213 = tpu.matmul %211, %212, %cst_79 {dimension_numbers = #tpu.dot_dimension_numbers<[1], [0], [0], [1], [0, 0, 1, 1], [], []>} : vector<4x4xf32>, vector<4x16xf32>, vector<4x16xf32> -> vector<4x16xf32>
    %214 = arith.addf %209, %213 : vector<4x16xf32>
    %215 = vector.extract_strided_slice %148 {offsets = [3, 0, 0], sizes = [1, 4, 4], strides = [1, 1, 1]} : vector<9x4x4xf32> to vector<1x4x4xf32>
    %216 = vector.shape_cast %215 : vector<1x4x4xf32> to vector<4x4xf32>
    %217 = vector.extract_strided_slice %198 {offsets = [0, 3], sizes = [4, 16], strides = [1, 1]} : vector<4x24xf32> to vector<4x16xf32>
    %cst_80 = arith.constant dense<0.000000e+00> : vector<4x16xf32>
    %218 = tpu.matmul %216, %217, %cst_80 {dimension_numbers = #tpu.dot_dimension_numbers<[1], [0], [0], [1], [0, 0, 1, 1], [], []>} : vector<4x4xf32>, vector<4x16xf32>, vector<4x16xf32> -> vector<4x16xf32>
    %219 = arith.addf %214, %218 : vector<4x16xf32>
    %220 = vector.extract_strided_slice %148 {offsets = [4, 0, 0], sizes = [1, 4, 4], strides = [1, 1, 1]} : vector<9x4x4xf32> to vector<1x4x4xf32>
    %221 = vector.shape_cast %220 : vector<1x4x4xf32> to vector<4x4xf32>
    %222 = vector.extract_strided_slice %198 {offsets = [0, 4], sizes = [4, 16], strides = [1, 1]} : vector<4x24xf32> to vector<4x16xf32>
    %cst_81 = arith.constant dense<0.000000e+00> : vector<4x16xf32>
    %223 = tpu.matmul %221, %222, %cst_81 {dimension_numbers = #tpu.dot_dimension_numbers<[1], [0], [0], [1], [0, 0, 1, 1], [], []>} : vector<4x4xf32>, vector<4x16xf32>, vector<4x16xf32> -> vector<4x16xf32>
    %224 = arith.addf %219, %223 : vector<4x16xf32>
    %225 = vector.extract_strided_slice %148 {offsets = [5, 0, 0], sizes = [1, 4, 4], strides = [1, 1, 1]} : vector<9x4x4xf32> to vector<1x4x4xf32>
    %226 = vector.shape_cast %225 : vector<1x4x4xf32> to vector<4x4xf32>
    %227 = vector.extract_strided_slice %198 {offsets = [0, 5], sizes = [4, 16], strides = [1, 1]} : vector<4x24xf32> to vector<4x16xf32>
    %cst_82 = arith.constant dense<0.000000e+00> : vector<4x16xf32>
    %228 = tpu.matmul %226, %227, %cst_82 {dimension_numbers = #tpu.dot_dimension_numbers<[1], [0], [0], [1], [0, 0, 1, 1], [], []>} : vector<4x4xf32>, vector<4x16xf32>, vector<4x16xf32> -> vector<4x16xf32>
    %229 = arith.addf %224, %228 : vector<4x16xf32>
    %230 = vector.extract_strided_slice %148 {offsets = [6, 0, 0], sizes = [1, 4, 4], strides = [1, 1, 1]} : vector<9x4x4xf32> to vector<1x4x4xf32>
    %231 = vector.shape_cast %230 : vector<1x4x4xf32> to vector<4x4xf32>
    %232 = vector.extract_strided_slice %198 {offsets = [0, 6], sizes = [4, 16], strides = [1, 1]} : vector<4x24xf32> to vector<4x16xf32>
    %cst_83 = arith.constant dense<0.000000e+00> : vector<4x16xf32>
    %233 = tpu.matmul %231, %232, %cst_83 {dimension_numbers = #tpu.dot_dimension_numbers<[1], [0], [0], [1], [0, 0, 1, 1], [], []>} : vector<4x4xf32>, vector<4x16xf32>, vector<4x16xf32> -> vector<4x16xf32>
    %234 = arith.addf %229, %233 : vector<4x16xf32>
    %235 = vector.extract_strided_slice %148 {offsets = [7, 0, 0], sizes = [1, 4, 4], strides = [1, 1, 1]} : vector<9x4x4xf32> to vector<1x4x4xf32>
    %236 = vector.shape_cast %235 : vector<1x4x4xf32> to vector<4x4xf32>
    %237 = vector.extract_strided_slice %198 {offsets = [0, 7], sizes = [4, 16], strides = [1, 1]} : vector<4x24xf32> to vector<4x16xf32>
    %cst_84 = arith.constant dense<0.000000e+00> : vector<4x16xf32>
    %238 = tpu.matmul %236, %237, %cst_84 {dimension_numbers = #tpu.dot_dimension_numbers<[1], [0], [0], [1], [0, 0, 1, 1], [], []>} : vector<4x4xf32>, vector<4x16xf32>, vector<4x16xf32> -> vector<4x16xf32>
    %239 = arith.addf %234, %238 : vector<4x16xf32>
    %240 = vector.extract_strided_slice %148 {offsets = [8, 0, 0], sizes = [1, 4, 4], strides = [1, 1, 1]} : vector<9x4x4xf32> to vector<1x4x4xf32>
    %241 = vector.shape_cast %240 : vector<1x4x4xf32> to vector<4x4xf32>
    %242 = vector.extract_strided_slice %198 {offsets = [0, 8], sizes = [4, 16], strides = [1, 1]} : vector<4x24xf32> to vector<4x16xf32>
    %cst_85 = arith.constant dense<0.000000e+00> : vector<4x16xf32>
    %243 = tpu.matmul %241, %242, %cst_85 {dimension_numbers = #tpu.dot_dimension_numbers<[1], [0], [0], [1], [0, 0, 1, 1], [], []>} : vector<4x4xf32>, vector<4x16xf32>, vector<4x16xf32> -> vector<4x16xf32>
    %244 = arith.addf %239, %243 : vector<4x16xf32>
    %cst_86 = arith.constant dense<0.000000e+00> : vector<4xf32>
    %245 = vector.multi_reduction <add>, %196, %cst_86 [1] : vector<4x16xf32> to vector<4xf32>
    %246 = vector.shape_cast %245 : vector<4xf32> to vector<4x1xf32>
    %247 = arith.mulf %196, %196 : vector<4x16xf32>
    %cst_87 = arith.constant dense<0.000000e+00> : vector<4xf32>
    %248 = vector.multi_reduction <add>, %247, %cst_87 [1] : vector<4x16xf32> to vector<4xf32>
    %249 = vector.shape_cast %248 : vector<4xf32> to vector<4x1xf32>
    %cst_88 = arith.constant dense<0.000000e+00> : vector<4xf32>
    %250 = vector.multi_reduction <add>, %244, %cst_88 [1] : vector<4x16xf32> to vector<4xf32>
    %251 = vector.shape_cast %250 : vector<4xf32> to vector<4x1xf32>
    %252 = arith.addf %246, %251 : vector<4x1xf32>
    %253 = arith.mulf %244, %244 : vector<4x16xf32>
    %cst_89 = arith.constant dense<0.000000e+00> : vector<4xf32>
    %254 = vector.multi_reduction <add>, %253, %cst_89 [1] : vector<4x16xf32> to vector<4xf32>
    %255 = vector.shape_cast %254 : vector<4xf32> to vector<4x1xf32>
    %256 = arith.addf %249, %255 : vector<4x1xf32>
    %cst_90 = arith.constant 3.125000e-02 : f32
    %257 = vector.broadcast %cst_90 : f32 to vector<4x1xf32>
    %258 = arith.mulf %252, %257 : vector<4x1xf32>
    %cst_91 = arith.constant 3.125000e-02 : f32
    %259 = vector.broadcast %cst_91 : f32 to vector<4x1xf32>
    %260 = arith.mulf %256, %259 : vector<4x1xf32>
    %261 = arith.mulf %258, %258 : vector<4x1xf32>
    %262 = arith.subf %260, %261 : vector<4x1xf32>
    %cst_92 = arith.constant 0.000000e+00 : f32
    %263 = vector.broadcast %cst_92 : f32 to vector<4x1xf32>
    %264 = arith.maximumf %262, %263 : vector<4x1xf32>
    %c0_93 = arith.constant 0 : index
    %c0_94 = arith.constant 0 : index
    %265 = vector.load %arg5[%c0_93, %c0_94] : memref<4x1xf32, #tpu.memory_space<vmem>>, vector<4x1xf32>
    %cst_95 = arith.constant 9.99999974E-6 : f32
    %266 = vector.broadcast %cst_95 : f32 to vector<4x1xf32>
    %267 = arith.addf %264, %266 : vector<4x1xf32>
    %268 = math.rsqrt %267 : vector<4x1xf32>
    %269 = arith.mulf %265, %268 : vector<4x1xf32>
    %c0_96 = arith.constant 0 : index
    %c0_97 = arith.constant 0 : index
    %270 = vector.load %arg6[%c0_96, %c0_97] : memref<4x1xf32, #tpu.memory_space<vmem>>, vector<4x1xf32>
    %271 = arith.mulf %258, %269 : vector<4x1xf32>
    %272 = arith.subf %270, %271 : vector<4x1xf32>
    %273 = vector.broadcast %269 : vector<4x1xf32> to vector<4x16xf32>
    %274 = arith.mulf %196, %273 : vector<4x16xf32>
    %275 = vector.broadcast %272 : vector<4x1xf32> to vector<4x16xf32>
    %276 = arith.addf %274, %275 : vector<4x16xf32>
    %c0_98 = arith.constant 0 : index
    %c0_99 = arith.constant 0 : index
    %c0_100 = arith.constant 0 : index
    %277 = vector.load %arg0[%c0_98, %c0_99, %c0_100] : memref<2x4x16xf32, #tpu.memory_space<vmem>>, vector<1x4x16xf32>
    %278 = vector.shape_cast %277 : vector<1x4x16xf32> to vector<4x16xf32>
    %279 = arith.addf %276, %278 : vector<4x16xf32>
    %cst_101 = arith.constant 0.000000e+00 : f32
    %280 = vector.broadcast %cst_101 : f32 to vector<4x16xf32>
    %281 = arith.maximumf %279, %280 : vector<4x16xf32>
    %c0_102 = arith.constant 0 : index
    %c0_103 = arith.constant 0 : index
    %c0_104 = arith.constant 0 : index
    %282 = vector.load %arg7[%c0_102, %c0_103, %c0_104] : memref<2x4x16xf32, #tpu.memory_space<vmem>>, vector<1x4x16xf32>
    %283 = vector.shape_cast %282 : vector<1x4x16xf32> to vector<4x16xf32>
    %284 = vector.shape_cast %281 : vector<4x16xf32> to vector<1x4x16xf32>
    tpu.vector_store %arg7[%c0_102, %c0_103, %c0_104], %284 {strides = array<i32>} : memref<2x4x16xf32, #tpu.memory_space<vmem>>, vector<1x4x16xf32>,
    %285 = vector.broadcast %269 : vector<4x1xf32> to vector<4x16xf32>
    %286 = arith.mulf %244, %285 : vector<4x16xf32>
    %287 = vector.broadcast %272 : vector<4x1xf32> to vector<4x16xf32>
    %288 = arith.addf %286, %287 : vector<4x16xf32>
    %c1_105 = arith.constant 1 : index
    %c0_106 = arith.constant 0 : index
    %c0_107 = arith.constant 0 : index
    %289 = vector.load %arg0[%c1_105, %c0_106, %c0_107] : memref<2x4x16xf32, #tpu.memory_space<vmem>>, vector<1x4x16xf32>
    %290 = vector.shape_cast %289 : vector<1x4x16xf32> to vector<4x16xf32>
    %291 = arith.addf %288, %290 : vector<4x16xf32>
    %cst_108 = arith.constant 0.000000e+00 : f32
    %292 = vector.broadcast %cst_108 : f32 to vector<4x16xf32>
    %293 = arith.maximumf %291, %292 : vector<4x16xf32>
    %c1_109 = arith.constant 1 : index
    %c0_110 = arith.constant 0 : index
    %c0_111 = arith.constant 0 : index
    %294 = vector.load %arg7[%c1_109, %c0_110, %c0_111] : memref<2x4x16xf32, #tpu.memory_space<vmem>>, vector<1x4x16xf32>
    %295 = vector.shape_cast %294 : vector<1x4x16xf32> to vector<4x16xf32>
    %296 = vector.shape_cast %293 : vector<4x16xf32> to vector<1x4x16xf32>
    tpu.vector_store %arg7[%c1_109, %c0_110, %c0_111], %296 {strides = array<i32>} : memref<2x4x16xf32, #tpu.memory_space<vmem>>, vector<1x4x16xf32>,
    return
  }
}

</mosaic_0001>

<bundles_post_ra>
// kernel: basic_block_1d.1
= control target key start
LH: loop header
LB: loop body
LE: loop exit
PB: predicated region body
PF: predicated region fallthrough
CT: control target
= control target key end

     0   :  { %s3369_s26 = smov 4   ;;  %vm27_vm0 = vcmask 27648   ;;  %vm30_vm1 = vcmask 191648   ;;  %v3370_v2 = vmov 0.0   ;;  %s3748_s0 = inlined_call_operand.vmem [shape: f32[2,4,16], index: 0, kind: input, shape index: {}]   ;;  %s3749_s1 = inlined_call_operand.vmem [shape: f32[9,4,4], index: 1, kind: input, shape index: {}]   ;;  %s3750_s2 = inlined_call_operand.vmem [shape: f32[4,1], index: 2, kind: input, shape index: {}]   ;;  %s3751_s3 = inlined_call_operand.vmem [shape: f32[4,1], index: 3, kind: input, shape index: {}]   ;;  %s3752_s4 = inlined_call_operand.vmem [shape: f32[9,4,4], index: 4, kind: input, shape index: {}]   ;;  %s3753_s5 = inlined_call_operand.vmem [shape: f32[4,1], index: 5, kind: input, shape index: {}]   ;;  %s3754_s6 = inlined_call_operand.vmem [shape: f32[4,1], index: 6, kind: input, shape index: {}]   ;;  %s3755_s7 = inlined_call_operand.hbm [shape: f32[2,4,16], index: 7, kind: output, shape index: {}]  }
   0x1   :  { %v33_v0 = vld [vmem:[%s3748_s0] sm:$0xf]  ;;  %v34_v1 = vld [vmem:[%s3748_s0 + $0x4] sm:$0xf]  ;;  %28 = vst.msk [vmem:[#allocation2] sm:$0xf] %vm27_vm0, %v3370_v2  ;;  %3081 = vmatprep.subr.mxu0 %v3370_v2  ;;  %3126 = vmatprep.subr.mxu1 %v3370_v2 }
   0x2   :  { %37 = vrot.lane.b32.xlu0 %v33_v0, %s3369_s26  ;;  %29 = vst.msk [vmem:[#allocation2 + $0x4] sm:$0xf] %vm27_vm0, %v3370_v2 }
   0x3   :  { %12 = vsyncpa [#allocation4], 0  ;;  %31 = vst.msk [vmem:[#allocation2] sm:$0xf] %vm30_vm1, %v3370_v2  ;;  %vm3371_vm2 = vmmov 0   ;;  %vm43_vm3 = vcmask 158752  }
   0x4   :  { %32 = vst.msk [vmem:[#allocation2 + $0x4] sm:$0xf] %vm30_vm1, %v3370_v2  ;;  %3083 = vmatprep.mubr.msk.f32.mxu0 %vm3371_vm2, %v3370_v2  ;;  %3128 = vmatprep.mubr.msk.f32.mxu1 %vm3371_vm2, %v3370_v2  ;;  %s3372_s29 = smov 126   ;;  %s3373_s30 = smov 127   ;;  %vm63_vm4 = vcmask 1043456   ;;  %vm59_vm5 = vcmask 31744  }
   0x5   :  { %s3374_s8 = smov 125   ;;  %s3375_s9 = smov 124   ;;  %v47_v7 = vld [vmem:[%s3749_s1 + $0x4] sm:$0xf]  ;;  %v46_v10 = vld [vmem:[%s3749_s1] sm:$0xf] }
   0x6   :  { %39 = vrot.lane.b32.xlu0 %v34_v1, %s3369_s26  ;;  %s3376_s10 = smov 123   ;;  %s3377_s11 = smov 122   ;;  %v48_v13 = vld [vmem:[%s3749_s1 + $0x8] sm:$0xf]  ;;  %v49_v16 = vld [vmem:[%s3749_s1 + $0xc] sm:$0xf] }
   0x7   :  { %s3378_s12 = smov 121   ;;  %s3379_s13 = smov 120   ;;  %v50_v19 = vld [vmem:[%s3749_s1 + $0x10] sm:$0xf]  ;;  %v51_v22 = vld [vmem:[%s3749_s1 + $0x14] sm:$0xf] }
   0x8   :  { %v52_v25 = vld [vmem:[%s3749_s1 + $0x18] sm:$0xf]  ;;  %v53_v28 = vld [vmem:[%s3749_s1 + $0x1c] sm:$0xf]  ;;  %v54_v31 = vld [vmem:[%s3749_s1 + $0x20] sm:$0xf] }
   0x9   :  { %vm1431_vm6 = vcmask 125952   ;;  %v3380_v42 = vmov 0   ;;  %v1453_v55 = vld [vmem:[%s3750_s2] sm:$0xf] }
   0xa   :  { %3339 = vset.pattern.permute.xlu1 %v3380_v42  ;;  %3340 = vset.pattern.permute.xlu0 %v3380_v42  ;;  %v1457_v58 = vld [vmem:[%s3751_s3] sm:$0xf] }
  0x74   :  { %v38_v3 = vpop.permute.xlu0 %37 }
  0x75   :  { %44 = vst.msk [vmem:[#allocation2] sm:$0xf] %vm43_vm3, %v38_v3 }
  0x78   :  { %v40_v4 = vpop.permute.xlu0 %39 }
  0x79   :  { %45 = vst.msk [vmem:[#allocation2 + $0x4] sm:$0xf] %vm43_vm3, %v40_v4 }
  0x7c   :  { %v55_v5 = vld [vmem:[#allocation2] sm:$0xf] }
  0x7d   :  { %211 = vrot.lane.b32.xlu0 %v55_v5, %s3372_s29  ;;  %57 = vrot.lane.b32.xlu1 %v55_v5, %s3373_s30 }
  0x80   :  { %v758_v6 = vld [vmem:[#allocation2 + $0x4] sm:$0xf] }
  0x81   :  { %289 = vrot.lane.b32.xlu0 %v55_v5, %s3374_s8  ;;  %760 = vrot.lane.b32.xlu1 %v758_v6, %s3373_s30 }
  0x85   :  { %367 = vrot.lane.b32.xlu0 %v55_v5, %s3375_s9  ;;  %906 = vrot.lane.b32.xlu1 %v758_v6, %s3372_s29 }
  0x89   :  { %445 = vrot.lane.b32.xlu0 %v55_v5, %s3376_s10  ;;  %981 = vrot.lane.b32.xlu1 %v758_v6, %s3374_s8 }
  0x8d   :  { %523 = vrot.lane.b32.xlu0 %v55_v5, %s3377_s11  ;;  %1056 = vrot.lane.b32.xlu1 %v758_v6, %s3375_s9 }
  0x91   :  { %601 = vrot.lane.b32.xlu0 %v55_v5, %s3378_s12  ;;  %1131 = vrot.lane.b32.xlu1 %v758_v6, %s3376_s10 }
  0x95   :  { %679 = vrot.lane.b32.xlu0 %v55_v5, %s3379_s13  ;;  %1206 = vrot.lane.b32.xlu1 %v758_v6, %s3377_s11 }
  0x99   :  { %1281 = vrot.lane.b32.xlu1 %v758_v6, %s3378_s12 }
  0x9d   :  { %1356 = vrot.lane.b32.xlu1 %v758_v6, %s3379_s13 }
  0xef   :  { %v58_v8 = vpop.permute.xlu1 %57  ;;  %v212_v11 = vpop.permute.xlu0 %211 }
  0xf0   :  { %3082 = vmatpush3.msk.msra.mxu0 %vm63_vm4, %v58_v8 }
  0xf1   :  { %3084 = vmatmul.mubr.msk.f32.vlgmr.msra.gmra.mrb[0].mxu0 %vm59_vm5, %v47_v7  ;;  %3086 = vmatprep.subr.mxu0 %v3370_v2 }
  0xf2   :  { %3087 = vmatpush3.msk.msra.mxu0 %vm63_vm4, %v55_v5  ;;  %3088 = vmatprep.mubr.msk.f32.mxu0 %vm3371_vm2, %v3370_v2 }
  0xf3   :  { %v761_v9 = vpop.permute.xlu1 %760  ;;  %3091 = vmatprep.subr.mxu0 %v3370_v2  ;;  %v290_v14 = vpop.permute.xlu0 %289 }
  0xf4   :  { %3127 = vmatpush3.msk.msra.mxu1 %vm63_vm4, %v761_v9 }
  0xf5   :  { %3129 = vmatmul.mubr.msk.f32.vlgmr.msra.gmra.mrb[0].mxu1 %vm59_vm5, %v47_v7  ;;  %3131 = vmatprep.subr.mxu1 %v3370_v2 }
  0xf6   :  { %3132 = vmatpush3.msk.msra.mxu1 %vm63_vm4, %v758_v6  ;;  %3133 = vmatprep.mubr.msk.f32.mxu1 %vm3371_vm2, %v3370_v2 }
  0xf7   :  { %3136 = vmatprep.subr.mxu1 %v3370_v2  ;;  %v907_v12 = vpop.permute.xlu1 %906  ;;  %v368_v17 = vpop.permute.xlu0 %367 }
  0xf9   :  { %3089 = vmatmul.mubr.msk.f32.vlgmr.msra.gmra.mrb[0].mxu0 %vm59_vm5, %v46_v10 }
  0xfa   :  { %3092 = vmatpush3.msk.msra.mxu0 %vm63_vm4, %v212_v11  ;;  %3093 = vmatprep.mubr.msk.f32.mxu0 %vm3371_vm2, %v3370_v2 }
  0xfb   :  { %3096 = vmatprep.subr.mxu0 %v3370_v2  ;;  %v982_v15 = vpop.permute.xlu1 %981  ;;  %v446_v20 = vpop.permute.xlu0 %445 }
  0xfd   :  { %3134 = vmatmul.mubr.msk.f32.vlgmr.msra.gmra.mrb[0].mxu1 %vm59_vm5, %v46_v10  ;;  %v1487_v10 = vld [vmem:[%s3752_s4 + $0x4] sm:$0xf] }
  0xfe   :  { %3137 = vmatpush3.msk.msra.mxu1 %vm63_vm4, %v907_v12  ;;  %3138 = vmatprep.mubr.msk.f32.mxu1 %vm3371_vm2, %v3370_v2 }
  0xff   :  { %3141 = vmatprep.subr.mxu1 %v3370_v2  ;;  %v1057_v18 = vpop.permute.xlu1 %1056  ;;  %v524_v23 = vpop.permute.xlu0 %523 }
 0x101   :  { %3094 = vmatmul.mubr.msk.f32.vlgmr.msra.gmra.mrb[0].mxu0 %vm59_vm5, %v48_v13 }
 0x102   :  { %3097 = vmatpush3.msk.msra.mxu0 %vm63_vm4, %v290_v14  ;;  %3098 = vmatprep.mubr.msk.f32.mxu0 %vm3371_vm2, %v3370_v2 }
 0x103   :  { %3101 = vmatprep.subr.mxu0 %v3370_v2  ;;  %v1132_v21 = vpop.permute.xlu1 %1131  ;;  %v602_v26 = vpop.permute.xlu0 %601 }
 0x105   :  { %3139 = vmatmul.mubr.msk.f32.vlgmr.msra.gmra.mrb[0].mxu1 %vm59_vm5, %v48_v13  ;;  %v1486_v13 = vld [vmem:[%s3752_s4] sm:$0xf] }
 0x106   :  { %3142 = vmatpush3.msk.msra.mxu1 %vm63_vm4, %v982_v15  ;;  %3143 = vmatprep.mubr.msk.f32.mxu1 %vm3371_vm2, %v3370_v2 }
 0x107   :  { %3146 = vmatprep.subr.mxu1 %v3370_v2  ;;  %v1207_v24 = vpop.permute.xlu1 %1206  ;;  %v680_v29 = vpop.permute.xlu0 %679 }
 0x109   :  { %3099 = vmatmul.mubr.msk.f32.vlgmr.msra.gmra.mrb[0].mxu0 %vm59_vm5, %v49_v16 }
 0x10a   :  { %3102 = vmatpush3.msk.msra.mxu0 %vm63_vm4, %v368_v17  ;;  %3103 = vmatprep.mubr.msk.f32.mxu0 %vm3371_vm2, %v3370_v2 }
 0x10b   :  { %3106 = vmatprep.subr.mxu0 %v3370_v2  ;;  %v1282_v27 = vpop.permute.xlu1 %1281 }
 0x10d   :  { %3144 = vmatmul.mubr.msk.f32.vlgmr.msra.gmra.mrb[0].mxu1 %vm59_vm5, %v49_v16  ;;  %v1488_v16 = vld [vmem:[%s3752_s4 + $0x8] sm:$0xf] }
 0x10e   :  { %3147 = vmatpush3.msk.msra.mxu1 %vm63_vm4, %v1057_v18  ;;  %3148 = vmatprep.mubr.msk.f32.mxu1 %vm3371_vm2, %v3370_v2 }
 0x10f   :  { %3151 = vmatprep.subr.mxu1 %v3370_v2  ;;  %v1357_v30 = vpop.permute.xlu1 %1356 }
 0x111   :  { %3104 = vmatmul.mubr.msk.f32.vlgmr.msra.gmra.mrb[0].mxu0 %vm59_vm5, %v50_v19 }
 0x112   :  { %3107 = vmatpush3.msk.msra.mxu0 %vm63_vm4, %v446_v20  ;;  %3108 = vmatprep.mubr.msk.f32.mxu0 %vm3371_vm2, %v3370_v2 }
 0x113   :  { %3111 = vmatprep.subr.mxu0 %v3370_v2 }
 0x115   :  { %3149 = vmatmul.mubr.msk.f32.vlgmr.msra.gmra.mrb[0].mxu1 %vm59_vm5, %v50_v19  ;;  %v1489_v19 = vld [vmem:[%s3752_s4 + $0xc] sm:$0xf] }
 0x116   :  { %3152 = vmatpush3.msk.msra.mxu1 %vm63_vm4, %v1132_v21  ;;  %3153 = vmatprep.mubr.msk.f32.mxu1 %vm3371_vm2, %v3370_v2 }
 0x117   :  { %3156 = vmatprep.subr.mxu1 %v3370_v2 }
 0x119   :  { %3109 = vmatmul.mubr.msk.f32.vlgmr.msra.gmra.mrb[0].mxu0 %vm59_vm5, %v51_v22 }
 0x11a   :  { %3112 = vmatpush3.msk.msra.mxu0 %vm63_vm4, %v524_v23  ;;  %3113 = vmatprep.mubr.msk.f32.mxu0 %vm3371_vm2, %v3370_v2 }
 0x11b   :  { %3116 = vmatprep.subr.mxu0 %v3370_v2 }
 0x11d   :  { %3154 = vmatmul.mubr.msk.f32.vlgmr.msra.gmra.mrb[0].mxu1 %vm59_vm5, %v51_v22  ;;  %v1490_v22 = vld [vmem:[%s3752_s4 + $0x10] sm:$0xf] }
 0x11e   :  { %3157 = vmatpush3.msk.msra.mxu1 %vm63_vm4, %v1207_v24  ;;  %3158 = vmatprep.mubr.msk.f32.mxu1 %vm3371_vm2, %v3370_v2 }
 0x11f   :  { %3161 = vmatprep.subr.mxu1 %v3370_v2 }
 0x121   :  { %3114 = vmatmul.mubr.msk.f32.vlgmr.msra.gmra.mrb[0].mxu0 %vm59_vm5, %v52_v25 }
 0x122   :  { %3117 = vmatpush3.msk.msra.mxu0 %vm63_vm4, %v602_v26  ;;  %3118 = vmatprep.mubr.msk.f32.mxu0 %vm3371_vm2, %v3370_v2 }
 0x123   :  { %3121 = vmatprep.subr.mxu0 %v3370_v2 }
 0x125   :  { %3159 = vmatmul.mubr.msk.f32.vlgmr.msra.gmra.mrb[0].mxu1 %vm59_vm5, %v52_v25  ;;  %v1491_v25 = vld [vmem:[%s3752_s4 + $0x14] sm:$0xf] }
 0x126   :  { %3162 = vmatpush3.msk.msra.mxu1 %vm63_vm4, %v1282_v27  ;;  %3163 = vmatprep.mubr.msk.f32.mxu1 %vm3371_vm2, %v3370_v2 }
 0x127   :  { %3166 = vmatprep.subr.mxu1 %v3370_v2 }
 0x129   :  { %3119 = vmatmul.mubr.msk.f32.vlgmr.msra.gmra.mrb[0].mxu0 %vm59_vm5, %v53_v28 }
 0x12a   :  { %3122 = vmatpush3.msk.msra.mxu0 %vm63_vm4, %v680_v29  ;;  %3123 = vmatprep.mubr.msk.f32.mxu0 %vm3371_vm2, %v3370_v2 }
 0x12b   :  { %3171 = vmatprep.subr.mxu0 %v3370_v2 }
 0x12d   :  { %3164 = vmatmul.mubr.msk.f32.vlgmr.msra.gmra.mrb[0].mxu1 %vm59_vm5, %v53_v28  ;;  %v1492_v28 = vld [vmem:[%s3752_s4 + $0x18] sm:$0xf] }
 0x12e   :  { %3167 = vmatpush3.msk.msra.mxu1 %vm63_vm4, %v1357_v30  ;;  %3168 = vmatprep.mubr.msk.f32.mxu1 %vm3371_vm2, %v3370_v2 }
 0x12f   :  { %3216 = vmatprep.subr.mxu1 %v3370_v2 }
 0x131   :  { %3124 = vmatmul.mubr.msk.f32.vlgmr.msra.gmra.mrb[0].mxu0 %vm59_vm5, %v54_v31 }
 0x132   :  { %3173 = vmatprep.mubr.msk.f32.mxu0 %vm3371_vm2, %v3370_v2 }
 0x135   :  { %3169 = vmatmul.mubr.msk.f32.vlgmr.msra.gmra.mrb[0].mxu1 %vm59_vm5, %v54_v31  ;;  %v1493_v31 = vld [vmem:[%s3752_s4 + $0x1c] sm:$0xf] }
 0x136   :  { %3218 = vmatprep.mubr.msk.f32.mxu1 %vm3371_vm2, %v3370_v2 }
 0x204   :  { %v752_v32 = vpop.f32.mrb[0].mxu0 }
 0x205   :  { %v3125_v33 = vpop.f32.mrb[1].mxu0  ;;  %v1432_v34 = vsel %vm1431_vm6, %v752_v32, 0.0  ;;  %v1435_v35 = vmul.f32 %v752_v32, %v752_v32 }
 0x206   :  { %1433 = vadd.xlane.f32.xlu0 %v1432_v34  ;;  %v1494_v34 = vld [vmem:[%s3752_s4 + $0x20] sm:$0xf] }
 0x207   :  { %v1436_v38 = vsel %vm1431_vm6, %v1435_v35, 0.0 }
 0x208   :  { %v1426_v36 = vpop.f32.mrb[0].mxu1 }
 0x209   :  { %v3170_v37 = vpop.f32.mrb[1].mxu1  ;;  %v1439_v39 = vsel %vm1431_vm6, %v1426_v36, 0.0  ;;  %v1443_v40 = vmul.f32 %v1426_v36, %v1426_v36 }
 0x20a   :  { %1437 = vadd.xlane.f32.xlu0 %v1436_v38  ;;  %1440 = vadd.xlane.f32.xlu1 %v1439_v39 }
 0x20b   :  { %v1444_v41 = vsel %vm1431_vm6, %v1443_v40, 0.0 }
 0x20e   :  { %1445 = vadd.xlane.f32.xlu0 %v1444_v41 }
 0x293   :  { %v1434_v43 = vpop.xlane.xlu0 %1433 }
 0x297   :  { %v1438_v44 = vpop.xlane.xlu0 %1437  ;;  %v1441_v45 = vpop.xlane.xlu1 %1440 }
 0x298   :  { %v1442_v46 = vadd.f32 %v1441_v45, %v1434_v43 }
 0x29a   :  { %v1448_v47 = vmul.f32 0.03125, %v1442_v46 }
 0x29b   :  { %v1446_v48 = vpop.xlane.xlu0 %1445 }
 0x29c   :  { %v1447_v49 = vadd.f32 %v1446_v48, %v1438_v44  ;;  %v1450_v50 = vmul.f32 %v1448_v47, %v1448_v47 }
 0x29e   :  { %v1449_v51 = vmul.f32 0.03125, %v1447_v49 }
 0x2a0   :  { %v1451_v52 = vsub.f32 %v1449_v51, %v1450_v50 }
 0x2a2   :  { %v1452_v53 = vmax.f32 %v1451_v52, 0.0 }
 0x2a4   :  { %v1454_v54 = vadd.f32 1e-05, %v1452_v53 }
 0x2a6   :  { %3341 = vrsqrt.f32 %v1454_v54 }
 0x2b0   :  { %v3342_v56 = vpop.eup %3341 }
 0x2b1   :  { %v1456_v57 = vmul.f32 %v3342_v56, %v1453_v55  ;;  %v2889_v56 = vld [vmem:[%s3753_s5] sm:$0xf]  ;;  %s3381_s5 = smov [#allocation3]  }
 0x2b3   :  { %1462 = vperm.xlu1 %3339, %v1456_v57   ;;  %v1458_v59 = vmul.f32 %v1456_v57, %v1448_v47 }
 0x2b5   :  { %v1459_v60 = vsub.f32 %v1457_v58, %v1458_v59  ;;  %v2893_v59 = vld [vmem:[%s3754_s6] sm:$0xf]  ;;  %s2925_s6 = sshll.u32 %s3381_s5, 4  ;;  %s2926_s6 = int_to_ptr.vmem [resolvable:$true] %s2925_s6 }
 0x2b6   :  { %s3345_s2 = scalar_lea.vmem %s2926_s6, 128  ;;  %p3350_p1 = scmp.lt.s32.totalorder %s2926_s6, %s2926_s6 }
 0x2b7   :  { %1468 = vperm.xlu0 %3340, %v1459_v60   ;;  %p3346_p0 = scmp.ne.s32.totalorder %s2926_s6, %s3345_s2  ;;  %p3351_p2 = scmp.lt.s32.totalorder %s3345_s2, %s3345_s2 }
 0x2b9   :  { %p3352_p3 = por %p3351_p2, %p3350_p1 }
 0x2bb   :  { %p3353_p4 = pnand %p3352_p3, %p3346_p0 }
 0x332   :  { %v1463_v61 = vpop.permute.xlu1 %1462 }
 0x333   :  { %v1465_v62 = vmul.f32 %v1463_v61, %v752_v32  ;;  %v1478_v0 = vmul.f32 %v1463_v61, %v1426_v36 }
 0x336   :  { %v1469_v63 = vpop.permute.xlu0 %1468 }
 0x337   :  { %v1471_v1 = vadd.f32 %v1469_v63, %v1465_v62  ;;  %v1479_v4 = vadd.f32 %v1478_v0, %v1469_v63 }
 0x339   :  { %v1472_v3 = vmax.f32 %v1471_v1, 0.0  ;;  %v1480_v5 = vmax.f32 %v1479_v4, 0.0  ;;  %v2908_v1 = vld [vmem:[%s3748_s0] sm:$0xf] }
 0x33b   :  { %1474 = vrot.lane.b32.xlu1 %v1472_v3, %s3369_s26  ;;  %v3008_v3 = vld [vmem:[%s3748_s0 + $0x4] sm:$0xf] }
 0x33f   :  { %1482 = vrot.lane.b32.xlu1 %v1480_v5, %s3369_s26 }
 0x3ad   :  { %v1475_v6 = vpop.permute.xlu1 %1474 }
 0x3ae   :  { %1477 = vst.msk [vmem:[#allocation2] sm:$0xf] %vm43_vm3, %v1475_v6 }
 0x3b1   :  { %v1483_v7 = vpop.permute.xlu1 %1482 }
 0x3b2   :  { %1485 = vst.msk [vmem:[#allocation2 + $0x4] sm:$0xf] %vm43_vm3, %v1483_v7 }
 0x3b5   :  { %v1495_v8 = vld [vmem:[#allocation2] sm:$0xf] }
 0x3b6   :  { %1805 = vrot.lane.b32.xlu0 %v1495_v8, %s3375_s9  ;;  %1497 = vrot.lane.b32.xlu1 %v1495_v8, %s3373_s30 }
 0x3b9   :  { %v2195_v9 = vld [vmem:[#allocation2 + $0x4] sm:$0xf] }
 0x3ba   :  { %1883 = vrot.lane.b32.xlu0 %v1495_v8, %s3376_s10  ;;  %2197 = vrot.lane.b32.xlu1 %v2195_v9, %s3373_s30 }
 0x3be   :  { %1961 = vrot.lane.b32.xlu0 %v1495_v8, %s3377_s11  ;;  %1649 = vrot.lane.b32.xlu1 %v1495_v8, %s3372_s29 }
 0x3c2   :  { %2039 = vrot.lane.b32.xlu0 %v1495_v8, %s3378_s12  ;;  %2343 = vrot.lane.b32.xlu1 %v2195_v9, %s3372_s29 }
 0x3c6   :  { %2117 = vrot.lane.b32.xlu0 %v1495_v8, %s3379_s13  ;;  %1727 = vrot.lane.b32.xlu1 %v1495_v8, %s3374_s8 }
 0x3ca   :  { %2418 = vrot.lane.b32.xlu1 %v2195_v9, %s3374_s8 }
 0x3ce   :  { %2493 = vrot.lane.b32.xlu1 %v2195_v9, %s3375_s9 }
 0x3d2   :  { %2568 = vrot.lane.b32.xlu1 %v2195_v9, %s3376_s10 }
 0x3d6   :  { %2643 = vrot.lane.b32.xlu1 %v2195_v9, %s3377_s11 }
 0x3da   :  { %2718 = vrot.lane.b32.xlu1 %v2195_v9, %s3378_s12 }
 0x3de   :  { %2793 = vrot.lane.b32.xlu1 %v2195_v9, %s3379_s13 }
 0x428   :  { %v1498_v11 = vpop.permute.xlu1 %1497  ;;  %v1806_v20 = vpop.permute.xlu0 %1805 }
 0x429   :  { %3172 = vmatpush3.msk.msra.mxu0 %vm63_vm4, %v1498_v11 }
 0x42a   :  { %3174 = vmatmul.mubr.msk.f32.vlgmr.msra.gmra.mrb[2].mxu0 %vm59_vm5, %v1487_v10  ;;  %3176 = vmatprep.subr.mxu0 %v3370_v2 }
 0x42b   :  { %3177 = vmatpush3.msk.msra.mxu0 %vm63_vm4, %v1495_v8  ;;  %3178 = vmatprep.mubr.msk.f32.mxu0 %vm3371_vm2, %v3370_v2 }
 0x42c   :  { %v2198_v12 = vpop.permute.xlu1 %2197  ;;  %3181 = vmatprep.subr.mxu0 %v3370_v2  ;;  %v1884_v23 = vpop.permute.xlu0 %1883 }
 0x42d   :  { %3217 = vmatpush3.msk.msra.mxu1 %vm63_vm4, %v2198_v12 }
 0x42e   :  { %3219 = vmatmul.mubr.msk.f32.vlgmr.msra.gmra.mrb[2].mxu1 %vm59_vm5, %v1487_v10  ;;  %3221 = vmatprep.subr.mxu1 %v3370_v2 }
 0x42f   :  { %3222 = vmatpush3.msk.msra.mxu1 %vm63_vm4, %v2195_v9  ;;  %3223 = vmatprep.mubr.msk.f32.mxu1 %vm3371_vm2, %v3370_v2 }
 0x430   :  { %v1650_v14 = vpop.permute.xlu1 %1649  ;;  %3226 = vmatprep.subr.mxu1 %v3370_v2  ;;  %v1962_v26 = vpop.permute.xlu0 %1961 }
 0x432   :  { %3179 = vmatmul.mubr.msk.f32.vlgmr.msra.gmra.mrb[2].mxu0 %vm59_vm5, %v1486_v13 }
 0x433   :  { %3182 = vmatpush3.msk.msra.mxu0 %vm63_vm4, %v1650_v14  ;;  %3183 = vmatprep.mubr.msk.f32.mxu0 %vm3371_vm2, %v3370_v2 }
 0x434   :  { %v2344_v15 = vpop.permute.xlu1 %2343  ;;  %3186 = vmatprep.subr.mxu0 %v3370_v2  ;;  %v2040_v29 = vpop.permute.xlu0 %2039 }
 0x436   :  { %3224 = vmatmul.mubr.msk.f32.vlgmr.msra.gmra.mrb[2].mxu1 %vm59_vm5, %v1486_v13 }
 0x437   :  { %3227 = vmatpush3.msk.msra.mxu1 %vm63_vm4, %v2344_v15  ;;  %3228 = vmatprep.mubr.msk.f32.mxu1 %vm3371_vm2, %v3370_v2 }
 0x438   :  { %v1728_v17 = vpop.permute.xlu1 %1727  ;;  %3231 = vmatprep.subr.mxu1 %v3370_v2  ;;  %v2118_v32 = vpop.permute.xlu0 %2117 }
 0x43a   :  { %3184 = vmatmul.mubr.msk.f32.vlgmr.msra.gmra.mrb[2].mxu0 %vm59_vm5, %v1488_v16 }
 0x43b   :  { %3187 = vmatpush3.msk.msra.mxu0 %vm63_vm4, %v1728_v17  ;;  %3188 = vmatprep.mubr.msk.f32.mxu0 %vm3371_vm2, %v3370_v2 }
 0x43c   :  { %v2419_v18 = vpop.permute.xlu1 %2418  ;;  %3191 = vmatprep.subr.mxu0 %v3370_v2 }
 0x43e   :  { %3229 = vmatmul.mubr.msk.f32.vlgmr.msra.gmra.mrb[2].mxu1 %vm59_vm5, %v1488_v16 }
 0x43f   :  { %3232 = vmatpush3.msk.msra.mxu1 %vm63_vm4, %v2419_v18  ;;  %3233 = vmatprep.mubr.msk.f32.mxu1 %vm3371_vm2, %v3370_v2 }
 0x440   :  { %3236 = vmatprep.subr.mxu1 %v3370_v2  ;;  %v2494_v21 = vpop.permute.xlu1 %2493 }
 0x442   :  { %3189 = vmatmul.mubr.msk.f32.vlgmr.msra.gmra.mrb[2].mxu0 %vm59_vm5, %v1489_v19 }
 0x443   :  { %3192 = vmatpush3.msk.msra.mxu0 %vm63_vm4, %v1806_v20  ;;  %3193 = vmatprep.mubr.msk.f32.mxu0 %vm3371_vm2, %v3370_v2 }
 0x444   :  { %3196 = vmatprep.subr.mxu0 %v3370_v2  ;;  %v2569_v24 = vpop.permute.xlu1 %2568 }
 0x446   :  { %3234 = vmatmul.mubr.msk.f32.vlgmr.msra.gmra.mrb[2].mxu1 %vm59_vm5, %v1489_v19 }
 0x447   :  { %3237 = vmatpush3.msk.msra.mxu1 %vm63_vm4, %v2494_v21  ;;  %3238 = vmatprep.mubr.msk.f32.mxu1 %vm3371_vm2, %v3370_v2 }
 0x448   :  { %3241 = vmatprep.subr.mxu1 %v3370_v2  ;;  %v2644_v27 = vpop.permute.xlu1 %2643 }
 0x44a   :  { %3194 = vmatmul.mubr.msk.f32.vlgmr.msra.gmra.mrb[2].mxu0 %vm59_vm5, %v1490_v22 }
 0x44b   :  { %3197 = vmatpush3.msk.msra.mxu0 %vm63_vm4, %v1884_v23  ;;  %3198 = vmatprep.mubr.msk.f32.mxu0 %vm3371_vm2, %v3370_v2 }
 0x44c   :  { %3201 = vmatprep.subr.mxu0 %v3370_v2  ;;  %v2719_v30 = vpop.permute.xlu1 %2718 }
 0x44e   :  { %3239 = vmatmul.mubr.msk.f32.vlgmr.msra.gmra.mrb[2].mxu1 %vm59_vm5, %v1490_v22 }
 0x44f   :  { %3242 = vmatpush3.msk.msra.mxu1 %vm63_vm4, %v2569_v24  ;;  %3243 = vmatprep.mubr.msk.f32.mxu1 %vm3371_vm2, %v3370_v2 }
 0x450   :  { %3246 = vmatprep.subr.mxu1 %v3370_v2  ;;  %v2794_v33 = vpop.permute.xlu1 %2793 }
 0x452   :  { %3199 = vmatmul.mubr.msk.f32.vlgmr.msra.gmra.mrb[2].mxu0 %vm59_vm5, %v1491_v25 }
 0x453   :  { %3202 = vmatpush3.msk.msra.mxu0 %vm63_vm4, %v1962_v26  ;;  %3203 = vmatprep.mubr.msk.f32.mxu0 %vm3371_vm2, %v3370_v2 }
 0x454   :  { %3206 = vmatprep.subr.mxu0 %v3370_v2 }
 0x456   :  { %3244 = vmatmul.mubr.msk.f32.vlgmr.msra.gmra.mrb[2].mxu1 %vm59_vm5, %v1491_v25 }
 0x457   :  { %3247 = vmatpush3.msk.msra.mxu1 %vm63_vm4, %v2644_v27  ;;  %3248 = vmatprep.mubr.msk.f32.mxu1 %vm3371_vm2, %v3370_v2 }
 0x458   :  { %3251 = vmatprep.subr.mxu1 %v3370_v2 }
 0x45a   :  { %3204 = vmatmul.mubr.msk.f32.vlgmr.msra.gmra.mrb[2].mxu0 %vm59_vm5, %v1492_v28 }
 0x45b   :  { %3207 = vmatpush3.msk.msra.mxu0 %vm63_vm4, %v2040_v29  ;;  %3208 = vmatprep.mubr.msk.f32.mxu0 %vm3371_vm2, %v3370_v2 }
 0x45c   :  { %3211 = vmatprep.subr.mxu0 %v3370_v2 }
 0x45e   :  { %3249 = vmatmul.mubr.msk.f32.vlgmr.msra.gmra.mrb[2].mxu1 %vm59_vm5, %v1492_v28 }
 0x45f   :  { %3252 = vmatpush3.msk.msra.mxu1 %vm63_vm4, %v2719_v30  ;;  %3253 = vmatprep.mubr.msk.f32.mxu1 %vm3371_vm2, %v3370_v2 }
 0x460   :  { %3256 = vmatprep.subr.mxu1 %v3370_v2 }
 0x462   :  { %3209 = vmatmul.mubr.msk.f32.vlgmr.msra.gmra.mrb[2].mxu0 %vm59_vm5, %v1493_v31 }
 0x463   :  { %3212 = vmatpush3.msk.msra.mxu0 %vm63_vm4, %v2118_v32  ;;  %3213 = vmatprep.mubr.msk.f32.mxu0 %vm3371_vm2, %v3370_v2 }
 0x466   :  { %3254 = vmatmul.mubr.msk.f32.vlgmr.msra.gmra.mrb[2].mxu1 %vm59_vm5, %v1493_v31 }
 0x467   :  { %3257 = vmatpush3.msk.msra.mxu1 %vm63_vm4, %v2794_v33  ;;  %3258 = vmatprep.mubr.msk.f32.mxu1 %vm3371_vm2, %v3370_v2 }
 0x46a   :  { %3214 = vmatmul.mubr.msk.f32.vlgmr.msra.gmra.mrb[2].mxu0 %vm59_vm5, %v1494_v34 }
 0x46e   :  { %3259 = vmatmul.mubr.msk.f32.vlgmr.msra.gmra.mrb[2].mxu1 %vm59_vm5, %v1494_v34 }
 0x53d   :  { %v2190_v35 = vpop.f32.mrb[2].mxu0 }
 0x53e   :  { %v3215_v36 = vpop.f32.mrb[3].mxu0  ;;  %v2868_v37 = vsel %vm1431_vm6, %v2190_v35, 0.0  ;;  %v2871_v38 = vmul.f32 %v2190_v35, %v2190_v35 }
 0x53f   :  { %2869 = vadd.xlane.f32.xlu0 %v2868_v37 }
 0x540   :  { %v2872_v41 = vsel %vm1431_vm6, %v2871_v38, 0.0 }
 0x541   :  { %v2863_v39 = vpop.f32.mrb[2].mxu1 }
 0x542   :  { %v3260_v40 = vpop.f32.mrb[3].mxu1  ;;  %v2875_v42 = vsel %vm1431_vm6, %v2863_v39, 0.0  ;;  %v2879_v43 = vmul.f32 %v2863_v39, %v2863_v39 }
 0x543   :  { %2873 = vadd.xlane.f32.xlu0 %v2872_v41  ;;  %2876 = vadd.xlane.f32.xlu1 %v2875_v42 }
 0x544   :  { %v2880_v2 = vsel %vm1431_vm6, %v2879_v43, 0.0 }
 0x547   :  { %2881 = vadd.xlane.f32.xlu0 %v2880_v2 }
 0x5cc   :  { %v2870_v44 = vpop.xlane.xlu0 %2869 }
 0x5d0   :  { %v2874_v45 = vpop.xlane.xlu0 %2873  ;;  %v2877_v46 = vpop.xlane.xlu1 %2876 }
 0x5d1   :  { %v2878_v47 = vadd.f32 %v2877_v46, %v2870_v44 }
 0x5d3   :  { %v2884_v48 = vmul.f32 0.03125, %v2878_v47 }
 0x5d4   :  { %v2882_v49 = vpop.xlane.xlu0 %2881 }
 0x5d5   :  { %v2883_v50 = vadd.f32 %v2882_v49, %v2874_v45  ;;  %v2886_v51 = vmul.f32 %v2884_v48, %v2884_v48 }
 0x5d7   :  { %v2885_v52 = vmul.f32 0.03125, %v2883_v50 }
 0x5d9   :  { %v2887_v53 = vsub.f32 %v2885_v52, %v2886_v51 }
 0x5db   :  { %v2888_v54 = vmax.f32 %v2887_v53, 0.0 }
 0x5dd   :  { %v2890_v55 = vadd.f32 1e-05, %v2888_v54 }
 0x5df   :  { %3343 = vrsqrt.f32 %v2890_v55 }
 0x5e9   :  { %v3344_v57 = vpop.eup %3343 }
 0x5ea   :  { %v2892_v58 = vmul.f32 %v3344_v57, %v2889_v56 }
 0x5ec   :  { %2898 = vperm.xlu1 %3339, %v2892_v58   ;;  %v2894_v60 = vmul.f32 %v2892_v58, %v2884_v48 }
 0x5ee   :  { %v2895_v61 = vsub.f32 %v2893_v59, %v2894_v60 }
 0x5f0   :  { %2904 = vperm.xlu0 %3340, %v2895_v61  }
 0x66b   :  { %v2899_v62 = vpop.permute.xlu1 %2898 }
 0x66c   :  { %v2901_v63 = vmul.f32 %v2899_v62, %v2190_v35  ;;  %v2912_v0 = vmul.f32 %v2899_v62, %v2863_v39 }
 0x66f   :  { %v2905_v4 = vpop.permute.xlu0 %2904 }
 0x670   :  { %v2907_v5 = vadd.f32 %v2905_v4, %v2901_v63  ;;  %v2913_v6 = vadd.f32 %v2912_v0, %v2905_v4 }
 0x672   :  { %v2909_v7 = vadd.f32 %v2908_v1, %v2907_v5  ;;  %v2916_v8 = vadd.f32 %v3008_v3, %v2913_v6 }
 0x674   :  { %v2910_v9 = vmax.f32 %v2909_v7, 0.0  ;;  %v2917_v10 = vmax.f32 %v2916_v8, 0.0 }
 0x676   :  { %2911 = vst.msk [vmem:[#allocation3] sm:$0xf] %vm1431_vm6, %v2910_v9  ;;  %2919 = vst.msk [vmem:[#allocation3 + $0x4] sm:$0xf] %vm1431_vm6, %v2917_v10 }
 0x677   :  { %3356 = shalt.err (!%p3353_p4)
}
 0x678   :  { %s3357_s29 = scalar_lea.hbm %s3755_s7, 128 }
 0x679   :  { %p3358_p5 = scmp.ne.s32.totalorder %s3755_s7, %s3357_s29  ;;  %p3361_p6 = scmp.lt.u32.totalorder %s3357_s29, %s3755_s7 }
 0x67b   :  { %p3363_p7 = pnand %p3361_p6, %p3358_p5 }
 0x67d   :  { %3366 = shalt.err (!%p3363_p7)
}
 0x67e   :  { %s3382_s11 = smov 64  }
 0x67f   :  { %2931 = dma.vmem_to_hbm [thread:$0]  %s2926_s6, 128, %s3755_s7, [#allocation4], %s3382_s11, %s3382_s11, %s3369_s26  }
 0x680   :  { %3367 = dma.done.wait [#allocation4], 128  }
 0x681   :  { %3368 = vsyncadd [#allocation4], 4294967168 }
 0x682   :  { %2935 = vsyncpa [#allocation4], 1 }

</bundles_post_ra>
